<compile_context>
chip_gen: v5e
topology: v5e:2x2
jax: 0.10.0
libtpu: 0.0.40
codegen_flags: <defaults>
</compile_context>

<pallas_src>
import jax
import jax.numpy as jnp
from jax.experimental import pallas as pl
from jax.experimental.pallas import tpu as pltpu


def _round_up(x, m):
    return (x + m - 1) // m * m


def _discriminator_kernel(x_ref, weff_ref, mbig_ref, bias_ref, out_ref):
    # Stage 1: folded Linear + ConvTranspose taps -> one GEMM: (TB, E) x (E, K*D).
    u = jnp.dot(x_ref[...], weff_ref[...], preferred_element_type=jnp.float32)
    # Stage 2: time expansion as a single contraction against the precomputed static
    # 0/1 block mask (K*D, D*T_pad): lane-dense (unmasked vst) output store, biases
    # pre-folded into a single broadcast add.
    out_ref[...] = (jnp.dot(u.astype(mbig_ref.dtype), mbig_ref[...],
                            preferred_element_type=jnp.float32)
                    + bias_ref[...])


def discriminator_forward(x, params, *, timestep, kernel_size=3, stride=1,
                          padding=1, out_padding=0,
                          compute_dtype=jnp.float32, batch_tile=256):
    """Forward pass. Set compute_dtype=jnp.bfloat16 on v6e/v7x for MXU-native inputs
    (accumulation stays f32)."""
    wlin, blin, wconv, bconv = (params["wlin"], params["blin"],
                                params["wconv"], params["bconv"])
    B, E = x.shape
    C, D, K = wconv.shape                 # (reduced_size, input_dim, kernel_size)
    assert K == kernel_size and wlin.shape == (C, E)
    t_out = (timestep - 1) * stride - 2 * padding + kernel_size + out_padding
    KD = K * D
    DT = D * t_out
    DT_pad = _round_up(DT, 128)           # lane-dense (unmasked vst) output width

    # ---- one-time parameter folding (glue, no per-example compute) ----------------
    # wconv_flat[c, k*D + d] = wconv[c, d, k]
    wconv_flat = jnp.transpose(wconv, (0, 2, 1)).reshape(C, KD)
    w_eff = wlin.T @ wconv_flat                                    # (E, K*D)
    b_eff = blin @ wconv_flat                                      # (K*D,)

    # Static ConvTranspose1d tap-validity mask M[k, t]: output position t receives tap k
    # iff (t + padding - k) = i*stride for some 0 <= i < timestep.
    # NOTE: stride>1 / out_padding>0 follow the same formula but are not exercised by
    # reference_forward below; validate against PyTorch before relying on them.
    t_idx = jnp.arange(t_out)[None, :]
    k_idx = jnp.arange(K)[:, None]
    src = t_idx + padding - k_idx                                  # (K, t_out) = i*stride
    mask = ((src >= 0) & (src <= (timestep - 1) * stride) & (src % stride == 0)
            ).astype(jnp.float32)

    # Block-diagonal expansion: M_big[k*D + d, d'*t_out + t] = M[k, t] * (d == d'),
    # zero-padded on the lane dim to a multiple of 128.
    eye = jnp.eye(D, dtype=jnp.float32)
    m_big = (mask[:, None, None, :] * eye[None, :, :, None]).reshape(KD, DT)
    m_big = jnp.pad(m_big, ((0, 0), (0, DT_pad - DT)))

    # Fold both biases (linear bias routed through the conv, and the conv bias) into one
    # broadcast add in the kernel.
    bias_full = (b_eff @ m_big
                 + jnp.pad(jnp.repeat(bconv, t_out), (0, DT_pad - DT)))
    bias_full = bias_full.reshape(1, DT_pad).astype(jnp.float32)

    # ---- batch tiling / padding -----------------------------------------------------
    tb = batch_tile if B >= batch_tile else _round_up(B, 8)
    tb = max(8, _round_up(tb, 8))
    b_pad = _round_up(B, tb)
    x_p = jnp.pad(x, ((0, b_pad - B), (0, 0))).astype(compute_dtype)
    w_eff = w_eff.astype(compute_dtype)
    m_big = m_big.astype(compute_dtype)

    itemsize = jnp.dtype(compute_dtype).itemsize
    vmem_bytes = (2 * tb * E * itemsize            # double-buffered x tiles
                  + 2 * tb * DT_pad * 4            # double-buffered output tiles (f32)
                  + E * KD * itemsize              # resident weights
                  + KD * DT_pad * itemsize + DT_pad * 4)
    vmem_limit = int(min(max(2 * vmem_bytes, 8 * 1024 * 1024), 32 * 1024 * 1024))

    out_flat = pl.pallas_call(
        _discriminator_kernel,
        out_shape=jax.ShapeDtypeStruct((b_pad, DT_pad), jnp.float32),
        grid=(b_pad // tb,),
        in_specs=[
            pl.BlockSpec((tb, E), lambda i: (i, 0)),        # activations: tiled over batch
            pl.BlockSpec((E, KD), lambda i: (0, 0)),        # weights: resident in VMEM
            pl.BlockSpec((KD, DT_pad), lambda i: (0, 0)),
            pl.BlockSpec((1, DT_pad), lambda i: (0, 0)),
        ],
        out_specs=pl.BlockSpec((tb, DT_pad), lambda i: (i, 0)),
        compiler_params=pltpu.CompilerParams(
            dimension_semantics=("parallel",),              # megacore-shard batch on v7x
            vmem_limit_bytes=vmem_limit),
    )(x_p, w_eff, m_big, bias_full)

    # Glue: strip batch/lane padding, restore PyTorch NCL layout.
    return out_flat[:B, :DT].reshape(B, D, t_out)


def init_params(key, out_channels, reduced_size, input_dim, kernel_size):
    # Deterministic synthetic weights, shapes match the torch module __init__.
    k1, k2, k3, k4 = jax.random.split(key, 4)
    wlin = 0.1 * jax.random.normal(k1, (reduced_size, out_channels), jnp.float32)
    blin = 0.1 * jax.random.normal(k2, (reduced_size,), jnp.float32)
    wconv = 0.1 * jax.random.normal(
        k3, (reduced_size, input_dim, kernel_size), jnp.float32)
    bconv = 0.1 * jax.random.normal(k4, (input_dim,), jnp.float32)
    return dict(wlin=wlin, blin=blin, wconv=wconv, bconv=bconv)


def reference_forward(x, params, *, timestep, kernel_size=3, stride=1,
                      padding=1, out_padding=0):
    # Plain-JAX reference (stride=1, out_padding=0 — the module defaults).
    assert stride == 1 and out_padding == 0
    y = x @ params["wlin"].T + params["blin"]                       # (B, C)
    z = jnp.broadcast_to(y[:, :, None], y.shape + (timestep,))      # nearest upsample
    pad = kernel_size - 1 - padding
    z_pad = jnp.pad(z, ((0, 0), (0, 0), (pad, pad)))
    w_flip = params["wconv"][:, :, ::-1]                            # (C, D, K)
    t_out = (timestep - 1) - 2 * padding + kernel_size
    out = jnp.zeros((x.shape[0], params["wconv"].shape[1], t_out), jnp.float32)
    for k in range(kernel_size):
        out = out + jnp.einsum("bct,cd->bdt",
                               z_pad[:, :, k:k + t_out], w_flip[:, :, k])
    return out + params["bconv"][None, :, None]


if __name__ == "__main__":
    B, out_channels, reduced_size, input_dim, timestep = 2, 16, 32, 4, 16

    key = jax.random.PRNGKey(0)
    kx, kp = jax.random.split(key)
    x = jax.random.normal(kx, (B, out_channels), jnp.float32)
    params = init_params(kp, out_channels, reduced_size, input_dim, kernel_size=3)

    out = discriminator_forward(x, params, timestep=timestep)
    out = jax.block_until_ready(out)

    ref = reference_forward(x, params, timestep=timestep)
    assert out.shape == (B, input_dim, timestep), out.shape
    assert jnp.allclose(out, ref, atol=1e-3, rtol=1e-3), float(
        jnp.max(jnp.abs(out - ref)))
    print("KERNEL_OK")
</pallas_src>

<mosaic_0001>
module attributes {stable_mosaic.version = 11 : i64} {
  func.func @_discriminator_kernel(%arg0: i32, %arg1: memref<8x16xf32, #tpu.memory_space<vmem>>, %arg2: memref<16x12xf32, #tpu.memory_space<vmem>>, %arg3: memref<12x128xf32, #tpu.memory_space<vmem>>, %arg4: memref<1x128xf32, #tpu.memory_space<vmem>>, %arg5: memref<8x128xf32, #tpu.memory_space<vmem>>) attributes {dimension_semantics = [#tpu.dimension_semantics<parallel>], iteration_bounds = array<i64: 1>, scalar_prefetch = 0 : i64, scratch_operands = 0 : i64, tpu.core_type = #tpu.core_type<tc>, window_params = [{transform_indices = @transform_0, window_bounds = array<i64: 8, 16>}, {pipeline_mode = #tpu.pipeline_mode<synchronous>, transform_indices = @transform_1, window_bounds = array<i64: 16, 12>}, {pipeline_mode = #tpu.pipeline_mode<synchronous>, transform_indices = @transform_2, window_bounds = array<i64: 12, 128>}, {pipeline_mode = #tpu.pipeline_mode<synchronous>, transform_indices = @transform_3, window_bounds = array<i64: 1, 128>}, {transform_indices = @transform_4, window_bounds = array<i64: 8, 128>}]} {
    %c0 = arith.constant 0 : index
    %c0_0 = arith.constant 0 : index
    %0 = vector.load %arg1[%c0, %c0_0] : memref<8x16xf32, #tpu.memory_space<vmem>>, vector<8x16xf32>
    %c0_1 = arith.constant 0 : index
    %c0_2 = arith.constant 0 : index
    %1 = vector.load %arg2[%c0_1, %c0_2] : memref<16x12xf32, #tpu.memory_space<vmem>>, vector<16x12xf32>
    %cst = arith.constant dense<0.000000e+00> : vector<8x12xf32>
    %2 = tpu.matmul %0, %1, %cst {dimension_numbers = #tpu.dot_dimension_numbers<[1], [0], [0], [1], [0, 0, 1, 1], [], []>} : vector<8x16xf32>, vector<16x12xf32>, vector<8x12xf32> -> vector<8x12xf32>
    %c0_3 = arith.constant 0 : index
    %c0_4 = arith.constant 0 : index
    %3 = vector.load %arg3[%c0_3, %c0_4] : memref<12x128xf32, #tpu.memory_space<vmem>>, vector<12x128xf32>
    %cst_5 = arith.constant dense<0.000000e+00> : vector<8x128xf32>
    %4 = tpu.matmul %2, %3, %cst_5 {dimension_numbers = #tpu.dot_dimension_numbers<[1], [0], [0], [1], [0, 0, 1, 1], [], []>} : vector<8x12xf32>, vector<12x128xf32>, vector<8x128xf32> -> vector<8x128xf32>
    %c0_6 = arith.constant 0 : index
    %c0_7 = arith.constant 0 : index
    %5 = vector.load %arg4[%c0_6, %c0_7] : memref<1x128xf32, #tpu.memory_space<vmem>>, vector<1x128xf32>
    %6 = vector.broadcast %5 : vector<1x128xf32> to vector<8x128xf32>
    %7 = arith.addf %4, %6 : vector<8x128xf32>
    %c0_8 = arith.constant 0 : index
    %c0_9 = arith.constant 0 : index
    %8 = vector.load %arg5[%c0_8, %c0_9] : memref<8x128xf32, #tpu.memory_space<vmem>>, vector<8x128xf32>
    tpu.vector_store %arg5[%c0_8, %c0_9], %7 {strides = array<i32>} : memref<8x128xf32, #tpu.memory_space<vmem>>, vector<8x128xf32>,
    return
  }
  func.func @transform_0(%arg0: i32) -> (i32, i32) {
    %c0_i32 = arith.constant 0 : i32
    %c0_i32_0 = arith.constant 0 : i32
    return %arg0, %c0_i32 : i32, i32
  }
  func.func @transform_1(%arg0: i32) -> (i32, i32) {
    %c0_i32 = arith.constant 0 : i32
    %c0_i32_0 = arith.constant 0 : i32
    %c0_i32_1 = arith.constant 0 : i32
    return %c0_i32, %c0_i32_0 : i32, i32
  }
  func.func @transform_2(%arg0: i32) -> (i32, i32) {
    %c0_i32 = arith.constant 0 : i32
    %c0_i32_0 = arith.constant 0 : i32
    %c0_i32_1 = arith.constant 0 : i32
    return %c0_i32, %c0_i32_0 : i32, i32
  }
  func.func @transform_3(%arg0: i32) -> (i32, i32) {
    %c0_i32 = arith.constant 0 : i32
    %c0_i32_0 = arith.constant 0 : i32
    %c0_i32_1 = arith.constant 0 : i32
    return %c0_i32, %c0_i32_0 : i32, i32
  }
  func.func @transform_4(%arg0: i32) -> (i32, i32) {
    %c0_i32 = arith.constant 0 : i32
    %c0_i32_0 = arith.constant 0 : i32
    return %arg0, %c0_i32 : i32, i32
  }
}

</mosaic_0001>

<bundles_post_ra>
// kernel: tpu_custom_call.1
= control target key start
LH: loop header
LB: loop body
LE: loop exit
PB: predicated region body
PF: predicated region fallthrough
CT: control target
= control target key end

     0   :  { %9 = vsyncpa [#allocation3], 0  ;;  %s301_s0 = inlined_call_operand.hbm [shape: f32[8,16], index: 0, kind: input, shape index: {}]   ;;  %s302_s1 = inlined_call_operand.hbm [shape: f32[16,12], index: 1, kind: input, shape index: {}]   ;;  %s303_s2 = inlined_call_operand.hbm [shape: f32[12,128], index: 2, kind: input, shape index: {}]   ;;  %s304_s3 = inlined_call_operand.vmem [shape: f32[1,128], index: 3, kind: input, shape index: {}]   ;;  %s305_s4 = inlined_call_operand.hbm [shape: f32[8,128], index: 4, kind: output, shape index: {}]  }
   0x1   :  { %10 = vsyncpa [#allocation6], 0  ;;  %s27_s17 = sshll.u32 %s302_s1, 4  ;;  %s28_s17 = int_to_ptr.hbm [resolvable:$true] %s27_s17 }
   0x2   :  { %11 = vsyncpa [#allocation4], 0  ;;  %s255_s18 = smov [#allocation5]   ;;  %s17_s22 = sshll.u32 %s301_s0, 4  ;;  %s18_s22 = int_to_ptr.hbm [resolvable:$true] %s17_s22 }
   0x3   :  { %s29_s19 = sshll.u32 %s255_s18, 4  ;;  %s256_s23 = smov 128   ;;  %s30_s19 = int_to_ptr.vmem [resolvable:$true] %s29_s19 }
   0x4   :  { %s257_s24 = smov 8   ;;  %s258_s25 = smov [#allocation2]  }
   0x5   :  { %35 = dma.hbm_to_vmem [thread:$0]  %s28_s17, 256, %s30_s19, [#allocation6], %s256_s23, %s256_s23, %s257_s24  }
   0x6   :  { %s19_s26 = sshll.u32 %s258_s25, 4  ;;  %s40_s29 = sshll.u32 %s303_s2, 4  ;;  %s20_s26 = int_to_ptr.vmem [resolvable:$true] %s19_s26  ;;  %s41_s29 = int_to_ptr.hbm [resolvable:$true] %s40_s29 }
   0x7   :  { %22 = dma.hbm_to_vmem [thread:$0]  %s18_s22, 128, %s20_s26, [#allocation3]  }
   0x8   :  { %s259_s1 = smov [#allocation7]  }
   0x9   :  { %s42_s30 = sshll.u32 %s259_s1, 4  ;;  %s43_s30 = int_to_ptr.vmem [resolvable:$true] %s42_s30 }
   0xa   :  { %48 = dma.hbm_to_vmem [thread:$0]  %s41_s29, 256, %s43_s30, [#allocation6], %s256_s23, %s256_s23, %s257_s24  }
   0xb   :  { %249 = dma.done.wait [#allocation3], 128  }
   0xc   :  { %250 = vsyncadd [#allocation3], 4294967168 }
   0xd   :  { %251 = dma.done.wait [#allocation6], 512  }
   0xe   :  { %252 = vsyncadd [#allocation6], 4294966784  ;;  %vm100_vm0 = vcmask 1043456   ;;  %v65_v0 = vld [vmem:[#allocation5 + $0x8] sm:$0xff]  ;;  %v64_v1 = vld [vmem:[#allocation5] sm:$0xff]  ;;  %vm66_vm1 = vcmask 130048  }
   0xf   :  { %84 = vmatpush.msra.mxu0 %v65_v0  ;;  %v63_v2 = vld [vmem:[#allocation2] sm:$0xff]  ;;  %v90_v4 = vld [vmem:[#allocation7] sm:$0xff]  ;;  %vm96_vm2 = vcmask 97280   ;;  %s260_s5 = smov [#allocation8]   ;;  %s132_s9 = sshll.u32 %s305_s4, 4  ;;  %s133_s9 = int_to_ptr.hbm [resolvable:$true] %s132_s9 }
  0x10   :  { %v91_v3 = vld [vmem:[#allocation7 + $0x8] sm:$0xf]  ;;  %s130_s6 = sshll.u32 %s260_s5, 4  ;;  %s131_s6 = int_to_ptr.vmem [resolvable:$true] %s130_s6 }
  0x11   :  { %144 = vmatpush.msk.msra.mxu1 %vm100_vm0, %v91_v3  ;;  %85 = vmatpush.msra.mxu0 %v64_v1  ;;  %v152_v6 = vld [vmem:[%s304_s3] ss:$0 sm:$0xff] }
  0x12   :  { %143 = vmatmul.msk.f32.vlgmr.msra.gmra.mxu0 %vm66_vm1, %v63_v2 }
  0x13   :  { %119 = vmatpush.msra.mxu1 %v90_v4 }
  0x8f   :  { %v87_v5 = vpop.f32.mrf.mxu0 }
  0x90   :  { %145 = vmatmul.msk.f32.vlgmr.msra.gmra.mxu1 %vm96_vm2, %v87_v5 }
 0x10d   :  { %v121_v7 = vpop.f32.mrf.mxu1 }
 0x10e   :  { %v122_v8 = vadd.f32 %v152_v6, %v121_v7 }
 0x110   :  { %124 = vst [vmem:[#allocation8] sm:$0xff] %v122_v8 }
 0x111   :  { %135 = dma.vmem_to_hbm [thread:$0]  %s131_s6, 128, %s133_s9, [#allocation4]  }
 0x112   :  { %253 = dma.done.wait [#allocation4], 128  }
 0x113   :  { %254 = vsyncadd [#allocation4], 4294967168 }
 0x114   :  { %140 = vsyncpa [#allocation3], 1 }
 0x115   :  { %141 = vsyncpa [#allocation6], 1 }
 0x116   :  { %142 = vsyncpa [#allocation4], 1 }

</bundles_post_ra>
